<compile_context>
chip_gen: v5e
topology: v5e:2x2
jax: 0.10.0
libtpu: 0.0.40
codegen_flags: <defaults>
</compile_context>

<pallas_src>
import jax
import jax.numpy as jnp
from jax.experimental import pallas as pl
from jax.experimental.pallas import tpu as pltpu


def _memory_copy_kernel(s_next_hbm, s_out_hbm, sem):
    # Materialized snapshot of the memory table: one direct HBM->HBM DMA.
    # No HBM->VMEM->vreg->VMEM->HBM round trip, no per-grid-step overhead.
    copy = pltpu.make_async_copy(s_next_hbm, s_out_hbm, sem)
    copy.start()
    copy.wait()


@jax.jit
def memory_update_pallas(s_next):
    """Materialize a private copy of S_next ([N, d_s]) via a single HBM DMA.

    Only needed when the caller requires a snapshot decoupled from S_next;
    the plain forward() semantics (S <- S_next) is a zero-cost rebind and is
    handled without any kernel in MemoryPallas.__call__.
    """
    n, d_s = s_next.shape
    nbytes = n * d_s * s_next.dtype.itemsize
    return pl.pallas_call(
        _memory_copy_kernel,
        out_shape=jax.ShapeDtypeStruct((n, d_s), s_next.dtype),
        in_specs=[pl.BlockSpec(memory_space=pl.ANY)],
        out_specs=pl.BlockSpec(memory_space=pl.ANY),
        scratch_shapes=[pltpu.SemaphoreType.DMA],
        cost_estimate=pl.CostEstimate(
            flops=0, transcendentals=0, bytes_accessed=2 * nbytes),
    )(s_next)


class MemoryPallas:
    """JAX/Pallas port of Memory(N_0, d_s)."""

    def __init__(self, N_0, d_s, dtype=jnp.float32):
        self.d_s = d_s
        self.num_nodes = N_0
        # __init_memory__: zero-initialized, non-trainable state table.
        # Preallocated capacity table (amortized-doubling growth for add_node).
        self._capacity = max(N_0, 1)
        self._table = jnp.zeros((self._capacity, d_s), dtype)

    @property
    def S(self):
        # Logical memory table = first num_nodes rows of the capacity table.
        if self.num_nodes == self._capacity:
            return self._table
        return self._table[: self.num_nodes]

    def __call__(self, S_next):
        # forward(S_next): S <- S_next.  The reference wraps S_next in an
        # nn.Parameter (same storage), so this is a zero-copy rebind — no
        # kernel launch, no HBM traffic.  Caller dtype is preserved.
        S_next = jnp.asarray(S_next)
        self._table = S_next
        self._capacity = S_next.shape[0]
        self.num_nodes = S_next.shape[0]
        return self.S

    def snapshot(self):
        # Materialized private copy of the current table via the Pallas
        # HBM->HBM DMA kernel (use when S must be decoupled from S_next).
        return memory_update_pallas(self.S)

    def add_node(self):
        # Append one zero row.  Amortized O(1): only copies the table when
        # capacity is exhausted (doubling), and preallocated rows are already
        # zero, matching the reference's zeros(1, d_s) append.
        if self.num_nodes == self._capacity:
            new_cap = max(2 * self._capacity, 8)
            grown = jnp.zeros((new_cap, self.d_s), self._table.dtype)
            grown = jax.lax.dynamic_update_slice(grown, self._table, (0, 0))
            self._table = grown
            self._capacity = new_cap
        self.num_nodes += 1
        return self.S


if __name__ == "__main__":
    key = jax.random.PRNGKey(0)
    k_small, k_big = jax.random.split(key, 2)

    N_0, d_s = 16, 128  # d_s = 128 -> lane-dense rows

    mem = MemoryPallas(N_0, d_s)
    assert mem.S.shape == (N_0, d_s)
    assert bool(jnp.all(mem.S == 0.0))

    # --- forward(): zero-copy rebind (reference semantics) ------------------
    S_next_small = jax.random.normal(k_small, (N_0, d_s), jnp.float32)
    S_new = jax.block_until_ready(mem(S_next_small))
    assert S_new.shape == (N_0, d_s)
    assert jnp.array_equal(S_new, S_next_small)

    # --- Pallas HBM->HBM DMA snapshot kernel (small table) ------------------
    S_copy = jax.block_until_ready(mem.snapshot())
    assert S_copy.shape == (N_0, d_s)
    assert jnp.array_equal(S_copy, S_next_small)

    # dtype is preserved through the kernel (bf16 memories move half the bytes)
    S_bf16 = S_next_small.astype(jnp.bfloat16)
    S_bf16_copy = jax.block_until_ready(memory_update_pallas(S_bf16))
    assert S_bf16_copy.dtype == jnp.bfloat16
    assert jnp.array_equal(S_bf16_copy, S_bf16)

    # --- add_node(): one extra zero row, amortized O(1) append --------------
    S_grown = jax.block_until_ready(mem.add_node())
    assert S_grown.shape == (N_0 + 1, d_s)
    assert jnp.array_equal(S_grown[:N_0], S_next_small)
    assert bool(jnp.all(S_grown[N_0] == 0.0))

    # a few more appends exercise the doubling path without re-growing
    for _ in range(3):
        S_grown = mem.add_node()
    S_grown = jax.block_until_ready(S_grown)
    assert S_grown.shape == (N_0 + 4, d_s)
    assert bool(jnp.all(S_grown[N_0:] == 0.0))

    # --- larger table through the DMA kernel --------------------------------
    N_big = 1024
    S_next_big = jax.random.normal(k_big, (N_big, d_s), jnp.float32)
    mem_big = MemoryPallas(N_big, d_s)
    mem_big(S_next_big)
    S_big_copy = jax.block_until_ready(mem_big.snapshot())
    assert S_big_copy.shape == (N_big, d_s)
    assert jnp.array_equal(S_big_copy, S_next_big)

    print("KERNEL_OK")
</pallas_src>

<mosaic_0001>
module attributes {stable_mosaic.version = 11 : i64} {
  func.func @_memory_copy_kernel(%arg0: memref<16x128xf32, #tpu.memory_space<any>>, %arg1: memref<16x128xf32, #tpu.memory_space<any>>, %arg2: memref<!tpu.dma_semaphore, #tpu.memory_space<semaphore_mem>>) attributes {dimension_semantics = [], scalar_prefetch = 0 : i64, scratch_operands = 1 : i64, tpu.core_type = #tpu.core_type<tc>} {
    tpu.enqueue_dma source(%arg0 : memref<16x128xf32, #tpu.memory_space<any>>) target(%arg1 : memref<16x128xf32, #tpu.memory_space<any>>) target_semaphore(%arg2 : memref<!tpu.dma_semaphore, #tpu.memory_space<semaphore_mem>>)
    tpu.wait_dma2 semaphore(%arg2 : memref<!tpu.dma_semaphore, #tpu.memory_space<semaphore_mem>>) src(%arg0 : memref<16x128xf32, #tpu.memory_space<any>>) dst(%arg1 : memref<16x128xf32, #tpu.memory_space<any>>)
    return
  }
}

</mosaic_0001>

<bundles_post_ra>
// kernel: memory_update_pallas.1
= control target key start
LH: loop header
LB: loop body
LE: loop exit
PB: predicated region body
PF: predicated region fallthrough
CT: control target
= control target key end

     0   :  { %s32_s12 = smov [#allocation2]   ;;  %s33_s13 = smov [#allocation3]   ;;  %s51_s0 = inlined_call_operand.hbm [shape: f32[16,128], index: 0, kind: input, shape index: {}]   ;;  %s52_s1 = inlined_call_operand.hbm [shape: f32[16,128], index: 1, kind: output, shape index: {}]  }
   0x1   :  { %s10_s8 = sshll.u32 %s51_s0, 4  ;;  %s12_s11 = sshll.u32 %s52_s1, 4  ;;  %s11_s8 = int_to_ptr.hbm [resolvable:$true] %s10_s8  ;;  %s13_s11 = int_to_ptr.hbm [resolvable:$true] %s12_s11 }
   0x2   :  { %s34_s14 = smov 0  }
   0x3   :  { %16 = dma.general %s11_s8, 256, %s13_s11, %s32_s12, %s33_s13, [#allocation4], %s34_s14, 0  }
   0x4   :  { %30 = dma.done.wait [#allocation2], 256 }
   0x5   :  { %31 = vsyncadd [#allocation2], 4294967040 }
   0x6   :  { %20 = vsyncmov [#allocation2] }
   0x9   :  { %s21_s15 = vpop.sfrf %20 }
   0xa   :  { %p26_p0 = scmp.ne.s32.totalorder %s21_s15, 0 }
   0xc   :  { %25 = shalt.err (%p26_p0)  }

</bundles_post_ra>
